<compile_context>
chip_gen: v7x
topology: tpu7x:2x2x1
jax: 0.10.0
libtpu: 0.0.40
codegen_flags: <defaults>
</compile_context>

<pallas_src>
import functools

import jax
import jax.numpy as jnp
from jax.experimental import pallas as pl
from jax.experimental.pallas import tpu as pltpu


def _round_up(n, m):
    return (n + m - 1) // m * m


def _cnn_kernel(x_ref, w1_ref, b1_ref, w2_ref, b2_ref, w3_ref, b3_ref, out_ref):
    # x_ref:  (TILE_B, C*K)   f32 flattened input tile (conv-as-matmul); cast to bf16 in-kernel
    # w1_ref: (C*K, 256)      bf16 conv weights, (in, out)
    # w2_ref: (256, 128)      bf16 fc1 weights, (in, out)
    # w3_ref: (128, nc_pad)   bf16 fc2 weights, zero-padded to lane-dense width
    # biases: (1, out) f32    broadcast over the batch-row axis
    # out_ref:(TILE_B, nc_pad) bf16
    x = x_ref[...].astype(jnp.bfloat16)

    # Conv1d (L_out == 1) == GEMM; f32 accumulate, f32 bias + ReLU.
    h1 = jnp.dot(x, w1_ref[...], preferred_element_type=jnp.float32) + b1_ref[...]
    h1 = jnp.maximum(h1, 0.0)

    # Linear(256 -> 128) + ReLU; cast activation to bf16 only at the MXU input.
    h2 = jnp.dot(h1.astype(jnp.bfloat16), w2_ref[...],
                 preferred_element_type=jnp.float32) + b2_ref[...]
    h2 = jnp.maximum(h2, 0.0)

    # Linear(128 -> nc_pad); write back bf16 (halves the dominant HBM stream).
    out = jnp.dot(h2.astype(jnp.bfloat16), w3_ref[...],
                  preferred_element_type=jnp.float32) + b3_ref[...]
    out_ref[...] = out.astype(out_ref.dtype)


def prepare_params(params, input_size, nc):
    """One-time preprocessing: transpose to (in, out), pad nc to a lane-dense 128
    multiple, cast matmul operands to bf16. Call once, reuse across forwards."""
    w_conv, b_conv, w_fc1, b_fc1, w_fc2, b_fc2 = params
    ck = input_size * 4
    nc_pad = _round_up(nc, 128)

    w1 = w_conv.reshape(256, ck).T.astype(jnp.bfloat16)          # (C*K, 256)
    b1 = b_conv.reshape(1, 256).astype(jnp.float32)
    w2 = w_fc1.T.astype(jnp.bfloat16)                            # (256, 128)
    b2 = b_fc1.reshape(1, 128).astype(jnp.float32)
    w3 = jnp.zeros((128, nc_pad), jnp.bfloat16).at[:, :nc].set(
        w_fc2.T.astype(jnp.bfloat16))                            # (128, nc_pad)
    b3 = jnp.zeros((1, nc_pad), jnp.float32).at[:, :nc].set(
        b_fc2.astype(jnp.float32))
    return (w1, b1, w2, b2, w3, b3)


@functools.partial(jax.jit, static_argnames=("nc", "tile_b"))
def one_dimensional_cnn_forward(x, prepared, *, nc, tile_b=4096):
    """x: (B, input_size, 4) float32, NCL layout (PyTorch Conv1d convention).
    prepared: output of prepare_params(). nc: static number of output classes."""
    w1, b1, w2, b2, w3, b3 = prepared
    B, C, K = x.shape
    assert K == 4, "Conv1d kernel_size=4 with Flatten->Linear(256,...) requires L == 4"
    ck = C * K
    assert w1.shape[0] == ck
    nc_pad = w3.shape[1]

    # Batch tile: multiple of 8 (sublane).  Cap so (a) tiny batches don't over-allocate and
    # (b) the grid keeps >= 4 steps (2 per TensorCore on v7x) once the batch allows it,
    # with a 256-row floor so per-step overhead stays amortized.
    b8 = _round_up(B, 8)
    cap = max(256, _round_up(-(-b8 // 4), 8))
    tile_b = _round_up(max(min(tile_b, cap, b8), 8), 8)

    # Conv-as-matmul flatten; row-major over (c, k) matches PyTorch's Conv1d [out, c, k].
    # No wrapper-side cast/pad: bf16 cast happens in-kernel; ragged last block is masked.
    x_flat = x.reshape(B, ck)

    out = pl.pallas_call(
        _cnn_kernel,
        out_shape=jax.ShapeDtypeStruct((B, nc_pad), jnp.bfloat16),
        grid=(pl.cdiv(B, tile_b),),
        in_specs=[
            pl.BlockSpec((tile_b, ck), lambda i: (i, 0)),     # x: tiled over batch
            pl.BlockSpec((ck, 256), lambda i: (0, 0)),        # w1: resident
            pl.BlockSpec((1, 256), lambda i: (0, 0)),         # b1: resident
            pl.BlockSpec((256, 128), lambda i: (0, 0)),       # w2: resident
            pl.BlockSpec((1, 128), lambda i: (0, 0)),         # b2: resident
            pl.BlockSpec((128, nc_pad), lambda i: (0, 0)),    # w3: resident
            pl.BlockSpec((1, nc_pad), lambda i: (0, 0)),      # b3: resident
        ],
        out_specs=pl.BlockSpec((tile_b, nc_pad), lambda i: (i, 0)),
        compiler_params=pltpu.CompilerParams(
            dimension_semantics=("parallel",),                # shard batch across TCs (v7x)
            vmem_limit_bytes=64 << 20,                        # headroom for tile_b=4096
        ),
    )(x_flat, w1, b1, w2, b2, w3, b3)

    return out[:, :nc].astype(jnp.float32)


def init_params(key, input_size, nc):
    """Deterministic synthetic parameters matching the PyTorch module's shapes."""
    k1, k2, k3, k4, k5, k6 = jax.random.split(key, 6)
    w_conv = jax.random.normal(k1, (256, input_size, 4), jnp.float32) * 0.05
    b_conv = jax.random.normal(k2, (256,), jnp.float32) * 0.05
    w_fc1 = jax.random.normal(k3, (128, 256), jnp.float32) * 0.05
    b_fc1 = jax.random.normal(k4, (128,), jnp.float32) * 0.05
    w_fc2 = jax.random.normal(k5, (nc, 128), jnp.float32) * 0.05
    b_fc2 = jax.random.normal(k6, (nc,), jnp.float32) * 0.05
    return (w_conv, b_conv, w_fc1, b_fc1, w_fc2, b_fc2)


def reference_forward(x, params):
    """Pure-JAX f32 reference mirroring the PyTorch forward exactly."""
    w_conv, b_conv, w_fc1, b_fc1, w_fc2, b_fc2 = params
    # Conv1d with L_out = 1: out[b, o] = sum_{c,k} x[b,c,k] * w[o,c,k] + b[o]
    conv = jnp.einsum("bck,ock->bo", x, w_conv) + b_conv
    h = jnp.maximum(conv, 0.0)                      # ReLU + Flatten (already (B, 256))
    h = jnp.maximum(h @ w_fc1.T + b_fc1, 0.0)       # Linear(256,128) + ReLU
    return h @ w_fc2.T + b_fc2                      # Linear(128, nc)


if __name__ == "__main__":
    key = jax.random.PRNGKey(0)
    kx, kp = jax.random.split(key)

    B, input_size, nc, L = 2, 16, 10, 4
    x = jax.random.normal(kx, (B, input_size, L), jnp.float32)
    params = init_params(kp, input_size, nc)

    prepared = prepare_params(params, input_size, nc)   # one-time preprocessing
    out = one_dimensional_cnn_forward(x, prepared, nc=nc)
    out = jax.block_until_ready(out)

    ref = reference_forward(x, params)
    assert out.shape == (B, nc)
    # bf16 MXU operands + bf16 output writeback (f32 accumulation) -> loosened tolerance
    # vs the pure-f32 reference (~3 significant decimal digits in the logits).
    assert jnp.allclose(out, ref, atol=5e-2, rtol=5e-2), "mismatch vs JAX reference"

    print("KERNEL_OK")
</pallas_src>

<mosaic_0001>
module attributes {stable_mosaic.version = 11 : i64} {
  func.func @_cnn_kernel(%arg0: i32, %arg1: memref<8x64xf32, #tpu.memory_space<vmem>>, %arg2: memref<64x256xbf16, #tpu.memory_space<vmem>>, %arg3: memref<1x256xf32, #tpu.memory_space<vmem>>, %arg4: memref<256x128xbf16, #tpu.memory_space<vmem>>, %arg5: memref<1x128xf32, #tpu.memory_space<vmem>>, %arg6: memref<128x128xbf16, #tpu.memory_space<vmem>>, %arg7: memref<1x128xf32, #tpu.memory_space<vmem>>, %arg8: memref<8x128xbf16, #tpu.memory_space<vmem>>) attributes {dimension_semantics = [#tpu.dimension_semantics<parallel>], iteration_bounds = array<i64: 1>, scalar_prefetch = 0 : i64, scratch_operands = 0 : i64, tpu.core_type = #tpu.core_type<tc>, window_params = [{transform_indices = @transform_0, window_bounds = array<i64: 8, 64>}, {pipeline_mode = #tpu.pipeline_mode<synchronous>, transform_indices = @transform_1, window_bounds = array<i64: 64, 256>}, {pipeline_mode = #tpu.pipeline_mode<synchronous>, transform_indices = @transform_2, window_bounds = array<i64: 1, 256>}, {pipeline_mode = #tpu.pipeline_mode<synchronous>, transform_indices = @transform_3, window_bounds = array<i64: 256, 128>}, {pipeline_mode = #tpu.pipeline_mode<synchronous>, transform_indices = @transform_4, window_bounds = array<i64: 1, 128>}, {pipeline_mode = #tpu.pipeline_mode<synchronous>, transform_indices = @transform_5, window_bounds = array<i64: 128, 128>}, {pipeline_mode = #tpu.pipeline_mode<synchronous>, transform_indices = @transform_6, window_bounds = array<i64: 1, 128>}, {transform_indices = @transform_7, window_bounds = array<i64: 8, 128>}]} {
    %c0 = arith.constant 0 : index
    %c0_0 = arith.constant 0 : index
    %0 = vector.load %arg1[%c0, %c0_0] : memref<8x64xf32, #tpu.memory_space<vmem>>, vector<8x64xf32>
    %1 = arith.truncf %0 : vector<8x64xf32> to vector<8x64xbf16>
    %c0_1 = arith.constant 0 : index
    %c0_2 = arith.constant 0 : index
    %2 = vector.load %arg2[%c0_1, %c0_2] : memref<64x256xbf16, #tpu.memory_space<vmem>>, vector<64x256xbf16>
    %cst = arith.constant dense<0.000000e+00> : vector<8x256xf32>
    %3 = tpu.matmul %1, %2, %cst {dimension_numbers = #tpu.dot_dimension_numbers<[1], [0], [0], [1], [0, 0, 1, 1], [], []>} : vector<8x64xbf16>, vector<64x256xbf16>, vector<8x256xf32> -> vector<8x256xf32>
    %c0_3 = arith.constant 0 : index
    %c0_4 = arith.constant 0 : index
    %4 = vector.load %arg3[%c0_3, %c0_4] : memref<1x256xf32, #tpu.memory_space<vmem>>, vector<1x256xf32>
    %5 = vector.broadcast %4 : vector<1x256xf32> to vector<8x256xf32>
    %6 = arith.addf %3, %5 : vector<8x256xf32>
    %cst_5 = arith.constant 0.000000e+00 : f32
    %7 = vector.broadcast %cst_5 : f32 to vector<8x256xf32>
    %8 = arith.maximumf %6, %7 : vector<8x256xf32>
    %9 = arith.truncf %8 : vector<8x256xf32> to vector<8x256xbf16>
    %c0_6 = arith.constant 0 : index
    %c0_7 = arith.constant 0 : index
    %10 = vector.load %arg4[%c0_6, %c0_7] : memref<256x128xbf16, #tpu.memory_space<vmem>>, vector<256x128xbf16>
    %cst_8 = arith.constant dense<0.000000e+00> : vector<8x128xf32>
    %11 = tpu.matmul %9, %10, %cst_8 {dimension_numbers = #tpu.dot_dimension_numbers<[1], [0], [0], [1], [0, 0, 1, 1], [], []>} : vector<8x256xbf16>, vector<256x128xbf16>, vector<8x128xf32> -> vector<8x128xf32>
    %c0_9 = arith.constant 0 : index
    %c0_10 = arith.constant 0 : index
    %12 = vector.load %arg5[%c0_9, %c0_10] : memref<1x128xf32, #tpu.memory_space<vmem>>, vector<1x128xf32>
    %13 = vector.broadcast %12 : vector<1x128xf32> to vector<8x128xf32>
    %14 = arith.addf %11, %13 : vector<8x128xf32>
    %cst_11 = arith.constant 0.000000e+00 : f32
    %15 = vector.broadcast %cst_11 : f32 to vector<8x128xf32>
    %16 = arith.maximumf %14, %15 : vector<8x128xf32>
    %17 = arith.truncf %16 : vector<8x128xf32> to vector<8x128xbf16>
    %c0_12 = arith.constant 0 : index
    %c0_13 = arith.constant 0 : index
    %18 = vector.load %arg6[%c0_12, %c0_13] : memref<128x128xbf16, #tpu.memory_space<vmem>>, vector<128x128xbf16>
    %cst_14 = arith.constant dense<0.000000e+00> : vector<8x128xf32>
    %19 = tpu.matmul %17, %18, %cst_14 {dimension_numbers = #tpu.dot_dimension_numbers<[1], [0], [0], [1], [0, 0, 1, 1], [], []>} : vector<8x128xbf16>, vector<128x128xbf16>, vector<8x128xf32> -> vector<8x128xf32>
    %c0_15 = arith.constant 0 : index
    %c0_16 = arith.constant 0 : index
    %20 = vector.load %arg7[%c0_15, %c0_16] : memref<1x128xf32, #tpu.memory_space<vmem>>, vector<1x128xf32>
    %21 = vector.broadcast %20 : vector<1x128xf32> to vector<8x128xf32>
    %22 = arith.addf %19, %21 : vector<8x128xf32>
    %23 = arith.truncf %22 : vector<8x128xf32> to vector<8x128xbf16>
    %c0_17 = arith.constant 0 : index
    %c0_18 = arith.constant 0 : index
    %24 = vector.load %arg8[%c0_17, %c0_18] : memref<8x128xbf16, #tpu.memory_space<vmem>>, vector<8x128xbf16>
    tpu.vector_store %arg8[%c0_17, %c0_18], %23 {strides = array<i32>} : memref<8x128xbf16, #tpu.memory_space<vmem>>, vector<8x128xbf16>,
    return
  }
  func.func @transform_0(%arg0: i32) -> (i32, i32) {
    %c0_i32 = arith.constant 0 : i32
    %c0_i32_0 = arith.constant 0 : i32
    return %arg0, %c0_i32 : i32, i32
  }
  func.func @transform_1(%arg0: i32) -> (i32, i32) {
    %c0_i32 = arith.constant 0 : i32
    %c0_i32_0 = arith.constant 0 : i32
    %c0_i32_1 = arith.constant 0 : i32
    return %c0_i32, %c0_i32_0 : i32, i32
  }
  func.func @transform_2(%arg0: i32) -> (i32, i32) {
    %c0_i32 = arith.constant 0 : i32
    %c0_i32_0 = arith.constant 0 : i32
    %c0_i32_1 = arith.constant 0 : i32
    return %c0_i32, %c0_i32_0 : i32, i32
  }
  func.func @transform_3(%arg0: i32) -> (i32, i32) {
    %c0_i32 = arith.constant 0 : i32
    %c0_i32_0 = arith.constant 0 : i32
    %c0_i32_1 = arith.constant 0 : i32
    return %c0_i32, %c0_i32_0 : i32, i32
  }
  func.func @transform_4(%arg0: i32) -> (i32, i32) {
    %c0_i32 = arith.constant 0 : i32
    %c0_i32_0 = arith.constant 0 : i32
    %c0_i32_1 = arith.constant 0 : i32
    return %c0_i32, %c0_i32_0 : i32, i32
  }
  func.func @transform_5(%arg0: i32) -> (i32, i32) {
    %c0_i32 = arith.constant 0 : i32
    %c0_i32_0 = arith.constant 0 : i32
    %c0_i32_1 = arith.constant 0 : i32
    return %c0_i32, %c0_i32_0 : i32, i32
  }
  func.func @transform_6(%arg0: i32) -> (i32, i32) {
    %c0_i32 = arith.constant 0 : i32
    %c0_i32_0 = arith.constant 0 : i32
    %c0_i32_1 = arith.constant 0 : i32
    return %c0_i32, %c0_i32_0 : i32, i32
  }
  func.func @transform_7(%arg0: i32) -> (i32, i32) {
    %c0_i32 = arith.constant 0 : i32
    %c0_i32_0 = arith.constant 0 : i32
    return %arg0, %c0_i32 : i32, i32
  }
}

</mosaic_0001>

<bundles_post_ra>
// kernel: one_dimensional_cnn_forward.1
= control target key start
LH: loop header
LB: loop body
LE: loop exit
PB: predicated region body
PF: predicated region fallthrough
CT: control target
= control target key end

     0   :  { %12 = vsyncpa [#allocation3], 0  ;;  %s1064_s0 = inlined_call_operand.hbm [shape: f32[2,64], index: 0, kind: input, shape index: {}]   ;;  %s1065_s1 = inlined_call_operand.hbm [shape: bf16[64,256], index: 1, kind: input, shape index: {}]   ;;  %s1066_s2 = inlined_call_operand.hbm [shape: f32[1,256], index: 2, kind: input, shape index: {}]   ;;  %s1067_s3 = inlined_call_operand.hbm [shape: bf16[256,128], index: 3, kind: input, shape index: {}]   ;;  %s1068_s4 = inlined_call_operand.hbm [shape: f32[1,128], index: 4, kind: input, shape index: {}]   ;;  %s1069_s5 = inlined_call_operand.hbm [shape: bf16[128,128], index: 5, kind: input, shape index: {}]   ;;  %s1070_s6 = inlined_call_operand.hbm [shape: f32[1,128], index: 6, kind: input, shape index: {}]   ;;  %s1071_s7 = inlined_call_operand.hbm [shape: bf16[2,128], index: 7, kind: output, shape index: {}]  }
   0x1   :  { %13 = vsyncpa [#allocation6], 0 }
   0x2   :  { %14 = vsyncpa [#allocation9], 0 }
   0x3   :  { %15 = vsyncpa [#allocation12], 0 }
   0x4   :  { %16 = vsyncpa [#allocation4], 0 }
   0x5   :  { %21 = vsyncadd [#allocation3], 96  ;;  %s900_s24 = smov [#allocation5]   ;;  %s714_s28 = scalar_lea.hbm %s1065_s1, 1024 }
   0x6   :  { %s34_s25 = sshll.u32 %s900_s24, 4  ;;  %p715_p0 = scmp.ne.s32.totalorder %s1065_s1, %s714_s28  ;;  %s35_s25 = int_to_ptr.vmem [resolvable:$true] %s34_s25 }
   0x7   :  { %p718_p1 = scmp.lt.u32.totalorder %s714_s28, %s1065_s1 }
   0x9   :  { %p720_p2 = pnand %p718_p1, %p715_p0 }
   0xb   :  { %723 = shalt.err (!%p720_p2)
}
   0xc   :  { %s724_s10 = scalar_lea.vmem %s35_s25, 1024  ;;  %p729_p4 = scmp.lt.s32.totalorder %s35_s25, %s35_s25 }
   0xd   :  { %p725_p3 = scmp.ne.s32.totalorder %s35_s25, %s724_s10  ;;  %p730_p5 = scmp.lt.s32.totalorder %s724_s10, %s724_s10 }
   0xf   :  { %p731_p6 = por %p730_p5, %p729_p4 }
  0x11   :  { %p732_p7 = pnand %p731_p6, %p725_p3 }
  0x13   :  { %735 = shalt.err (!%p732_p7)
}
  0x14   :  { %s901_s11 = smov 128   ;;  %s902_s12 = smov 8  }
  0x15   :  { %40 = dma.hbm_to_vmem [thread:$0]  %s1065_s1, 1024, %s35_s25, [#allocation6], %s901_s11, %s901_s11, %s902_s12  }
  0x16   :  { %s903_s15 = smov [#allocation8]   ;;  %s736_s19 = scalar_lea.hbm %s1067_s3, 2048 }
  0x17   :  { %s56_s16 = sshll.u32 %s903_s15, 4  ;;  %p737_p8 = scmp.ne.s32.totalorder %s1067_s3, %s736_s19  ;;  %s57_s16 = int_to_ptr.vmem [resolvable:$true] %s56_s16 }
  0x18   :  { %p740_p9 = scmp.lt.u32.totalorder %s736_s19, %s1067_s3 }
  0x1a   :  { %p742_p10 = pnand %p740_p9, %p737_p8 }
  0x1c   :  { %745 = shalt.err (!%p742_p10)
}
  0x1d   :  { %s746_s24 = scalar_lea.vmem %s57_s16, 2048  ;;  %p751_p12 = scmp.lt.s32.totalorder %s57_s16, %s57_s16 }
  0x1e   :  { %p747_p11 = scmp.ne.s32.totalorder %s57_s16, %s746_s24  ;;  %p752_p13 = scmp.lt.s32.totalorder %s746_s24, %s746_s24 }
  0x20   :  { %p753_p0 = por %p752_p13, %p751_p12 }
  0x22   :  { %p754_p1 = pnand %p753_p0, %p747_p11 }
  0x24   :  { %757 = shalt.err (!%p754_p1)
}
  0x25   :  { %s904_s1 = smov 64   ;;  %s905_s25 = smov 4  }
  0x26   :  { %62 = dma.hbm_to_vmem [thread:$0]  %s1067_s3, 2048, %s57_s16, [#allocation9], %s904_s1, %s904_s1, %s905_s25  }
  0x27   :  { %s906_s28 = smov [#allocation11]   ;;  %s907_s30 = smov [#allocation2]  }
  0x28   :  { %s78_s29 = sshll.u32 %s906_s28, 4  ;;  %s22_s8 = sshll.u32 %s907_s30, 4  ;;  %s79_s29 = int_to_ptr.vmem [resolvable:$true] %s78_s29  ;;  %s984_s8 = int_to_ptr.vmem [resolvable:$true] %s22_s8 }
  0x29   :  { %s758_s11 = scalar_lea.hbm %s1069_s5, 1024 }
  0x2a   :  { %p759_p2 = scmp.ne.s32.totalorder %s1069_s5, %s758_s11  ;;  %p762_p3 = scmp.lt.u32.totalorder %s758_s11, %s1069_s5 }
  0x2c   :  { %p764_p4 = pnand %p762_p3, %p759_p2 }
  0x2e   :  { %767 = shalt.err (!%p764_p4)
}
  0x2f   :  { %s768_s3 = scalar_lea.vmem %s79_s29, 1024  ;;  %p773_p6 = scmp.lt.s32.totalorder %s79_s29, %s79_s29 }
  0x30   :  { %p769_p5 = scmp.ne.s32.totalorder %s79_s29, %s768_s3  ;;  %p774_p7 = scmp.lt.s32.totalorder %s768_s3, %s768_s3 }
  0x32   :  { %p775_p8 = por %p774_p7, %p773_p6 }
  0x34   :  { %p776_p9 = pnand %p775_p8, %p769_p5 }
  0x36   :  { %779 = shalt.err (!%p776_p9)
}
  0x37   :  { %84 = dma.hbm_to_vmem [thread:$0]  %s1069_s5, 1024, %s79_s29, [#allocation12], %s904_s1, %s904_s1, %s905_s25  }
  0x38   :  { %s780_s20 = scalar_lea.hbm %s1064_s0, 32 }
  0x39   :  { %p781_p10 = scmp.ne.s32.totalorder %s1064_s0, %s780_s20  ;;  %p784_p11 = scmp.lt.u32.totalorder %s780_s20, %s1064_s0 }
  0x3b   :  { %p786_p12 = pnand %p784_p11, %p781_p10 }
  0x3d   :  { %789 = shalt.err (!%p786_p12)
}
  0x3e   :  { %s790_s26 = scalar_lea.vmem %s984_s8, 32  ;;  %s794_s5 = scalar_lea.vmem %s984_s8, 128 }
  0x3f   :  { %p791_p13 = scmp.ne.s32.totalorder %s984_s8, %s790_s26  ;;  %p795_p0 = scmp.lt.s32.totalorder %s984_s8, %s984_s8 }
  0x40   :  { %p796_p1 = scmp.lt.s32.totalorder %s794_s5, %s790_s26 }
  0x42   :  { %p797_p2 = por %p796_p1, %p795_p0 }
  0x44   :  { %p798_p3 = pnand %p797_p2, %p791_p13 }
  0x46   :  { %801 = shalt.err (!%p798_p3)
}
  0x47   :  { %s908_s1 = smov 32   ;;  %s909_s25 = smov 2  }
  0x48   :  { %28 = dma.hbm_to_vmem [thread:$0]  %s1064_s0, 32, %s984_s8, [#allocation3], %s908_s1, %s908_s1, %s909_s25  }
  0x49   :  { %s910_s29 = smov [#allocation7]   ;;  %s911_s9 = smov [#allocation10]  }
  0x4a   :  { %s47_s30 = sshll.u32 %s910_s29, 4  ;;  %s69_s10 = sshll.u32 %s911_s9, 4  ;;  %s48_s30 = int_to_ptr.vmem [resolvable:$true] %s47_s30  ;;  %s70_s10 = int_to_ptr.vmem [resolvable:$true] %s69_s10 }
  0x4b   :  { %s802_s13 = scalar_lea.hbm %s1066_s2, 32 }
  0x4c   :  { %p803_p4 = scmp.ne.s32.totalorder %s1066_s2, %s802_s13  ;;  %p806_p5 = scmp.lt.u32.totalorder %s802_s13, %s1066_s2 }
  0x4e   :  { %p808_p6 = pnand %p806_p5, %p803_p4 }
  0x50   :  { %811 = shalt.err (!%p808_p6)
}
  0x51   :  { %s812_s0 = scalar_lea.vmem %s48_s30, 32  ;;  %p817_p8 = scmp.lt.s32.totalorder %s48_s30, %s48_s30 }
  0x52   :  { %p813_p7 = scmp.ne.s32.totalorder %s48_s30, %s812_s0  ;;  %p818_p9 = scmp.lt.s32.totalorder %s812_s0, %s812_s0 }
  0x54   :  { %p819_p10 = por %p818_p9, %p817_p8 }
  0x56   :  { %p820_p11 = pnand %p819_p10, %p813_p7 }
  0x58   :  { %823 = shalt.err (!%p820_p11)
}
  0x59   :  { %50 = dma.hbm_to_vmem [thread:$0]  %s1066_s2, 32, %s48_s30, [#allocation6]  }
  0x5a   :  { %s824_s20 = scalar_lea.hbm %s1068_s4, 16 }
  0x5b   :  { %p825_p12 = scmp.ne.s32.totalorder %s1068_s4, %s824_s20  ;;  %p828_p13 = scmp.lt.u32.totalorder %s824_s20, %s1068_s4 }
  0x5d   :  { %p830_p0 = pnand %p828_p13, %p825_p12 }
  0x5f   :  { %833 = shalt.err (!%p830_p0)
}
  0x60   :  { %s834_s26 = scalar_lea.vmem %s70_s10, 16  ;;  %s838_s5 = scalar_lea.vmem %s70_s10, 32 }
  0x61   :  { %p835_p1 = scmp.ne.s32.totalorder %s70_s10, %s834_s26  ;;  %p839_p2 = scmp.lt.s32.totalorder %s70_s10, %s70_s10 }
  0x62   :  { %p840_p3 = scmp.lt.s32.totalorder %s838_s5, %s834_s26 }
  0x64   :  { %p841_p4 = por %p840_p3, %p839_p2 }
  0x66   :  { %p842_p5 = pnand %p841_p4, %p835_p1 }
  0x68   :  { %845 = shalt.err (!%p842_p5)
}
  0x69   :  { %72 = dma.hbm_to_vmem [thread:$0]  %s1068_s4, 16, %s70_s10, [#allocation9]  }
  0x6a   :  { %s912_s25 = smov [#allocation13]   ;;  %s846_s30 = scalar_lea.hbm %s1070_s6, 16 }
  0x6b   :  { %s91_s27 = sshll.u32 %s912_s25, 4  ;;  %p847_p6 = scmp.ne.s32.totalorder %s1070_s6, %s846_s30  ;;  %s92_s27 = int_to_ptr.vmem [resolvable:$true] %s91_s27 }
  0x6c   :  { %p850_p7 = scmp.lt.u32.totalorder %s846_s30, %s1070_s6 }
  0x6e   :  { %p852_p8 = pnand %p850_p7, %p847_p6 }
  0x70   :  { %855 = shalt.err (!%p852_p8)
}
  0x71   :  { %s856_s14 = scalar_lea.vmem %s92_s27, 16  ;;  %s860_s4 = scalar_lea.vmem %s92_s27, 32 }
  0x72   :  { %p857_p9 = scmp.ne.s32.totalorder %s92_s27, %s856_s14  ;;  %p861_p10 = scmp.lt.s32.totalorder %s92_s27, %s92_s27 }
  0x73   :  { %p862_p11 = scmp.lt.s32.totalorder %s860_s4, %s856_s14 }
  0x75   :  { %p863_p12 = por %p862_p11, %p861_p10 }
  0x77   :  { %p864_p13 = pnand %p863_p12, %p857_p9 }
  0x79   :  { %867 = shalt.err (!%p864_p13)
}
  0x7a   :  { %94 = dma.hbm_to_vmem [thread:$0]  %s1070_s6, 16, %s92_s27, [#allocation12]  }
  0x7b   :  { %890 = dma.done.wait [#allocation3], 128  }
  0x7c   :  { %891 = vsyncadd [#allocation3], 4294967168 }
  0x7d   :  { %892 = dma.done.wait [#allocation6], 1056  }
  0x7e   :  { %893 = vsyncadd [#allocation6], 4294966240 }
  0x7f   :  { %894 = dma.done.wait [#allocation9], 2064  }
  0x80   :  { %895 = vsyncadd [#allocation9], 4294965232 }
  0x81   :  { %896 = dma.done.wait [#allocation12], 1040  }
  0x82   :  { %897 = vsyncadd [#allocation12], 4294966256  ;;  %v913_v0 = vmov 0   ;;  %v678_v1 = vld [vmem:[#allocation5 + $0x4] ss:$8 sps:$4 sm:$0xff]   ;;  %v694_v13 = vld [vmem:[#allocation8 + $0x50] sm:$0xff]   ;;  %v129_v34 = vlaneseq }
  0x83   :  { %215 = vmatprep.mubr.bf16.mxu0 %v913_v0  ;;  %v680_v2 = vld [vmem:[#allocation5] ss:$8 sps:$4 sm:$0xff]   ;;  %183 = vmatprep.subr.bf16.mxu0 %v678_v1  ;;  %v681_v3 = vld [vmem:[#allocation5 + $0x14] ss:$8 sps:$4 sm:$0xff]   ;;  %v683_v4 = vld [vmem:[#allocation5 + $0x10] ss:$8 sps:$4 sm:$0xff]  }
  0x84   :  { %184 = vmatpush1.bf16.msra.mxu0 %v680_v2  ;;  %v684_v5 = vld [vmem:[#allocation5 + $0x24] ss:$8 sps:$4 sm:$0xff]   ;;  %v686_v6 = vld [vmem:[#allocation5 + $0x20] ss:$8 sps:$4 sm:$0xff]   ;;  %v687_v7 = vld [vmem:[#allocation5 + $0x34] ss:$8 sps:$4 sm:$0xff]  }
  0x85   :  { %185 = vmatprep.subr.bf16.mxu0 %v681_v3  ;;  %v690_v8 = vld [vmem:[#allocation8 + $0x40] sm:$0xff]   ;;  %v692_v10 = vld [vmem:[#allocation8 + $0x48] sm:$0xff]   ;;  %v117_v14 = vld [vmem:[#allocation2] sm:$0xff]  ;;  %vm179_vm0 = vcmask 523264   ;;  %v914_v28 = vmov 0.0   ;;  %v130_v35 = vshrl.u32 %v129_v34, 7 }
  0x86   :  { %v691_v9 = vld [vmem:[#allocation8] sm:$0xff]   ;;  %607 = vmatprep.subr.bf16.mxu1 %v690_v8  ;;  %v689_v11 = vld [vmem:[#allocation5 + $0x30] ss:$8 sps:$4 sm:$0xff]   ;;  %v118_v16 = vpack.c.bf16 %v117_v14, %v117_v14  ;;  %v127_v37 = vld [vmem:[#allocation7] sm:$0x3]  ;;  %vm915_vm1 = vmmov 0  }
  0x87   :  { %608 = vmatpush3.bf16.msra.mxu1 %v691_v9  ;;  %v693_v12 = vld [vmem:[#allocation8 + $0x8] sm:$0xff]   ;;  %v695_v15 = vld [vmem:[#allocation8 + $0x10] sm:$0xff]   ;;  %v696_v17 = vld [vmem:[#allocation8 + $0x58] sm:$0xff]   ;;  %v131_v36 = vsub.s32 0, %v130_v35  ;;  %v135_v38 = vsub.s32 1, %v130_v35 }
  0x88   :  { %186 = vmatpush1.bf16.msra.mxu0 %v683_v4  ;;  %609 = vmatprep.subr.bf16.mxu1 %v692_v10  ;;  %v697_v18 = vld [vmem:[#allocation8 + $0x18] sm:$0xff]   ;;  %v698_v19 = vld [vmem:[#allocation8 + $0x60] sm:$0xff]   ;;  %v700_v21 = vld [vmem:[#allocation8 + $0x68] sm:$0xff]   ;;  %v916_v62 = vmov 1966171168  }
  0x89   :  { %187 = vmatprep.subr.bf16.mxu0 %v684_v5  ;;  %v699_v20 = vld [vmem:[#allocation8 + $0x20] sm:$0xff]   ;;  %v701_v22 = vld [vmem:[#allocation8 + $0x28] sm:$0xff]   ;;  %v702_v23 = vld [vmem:[#allocation8 + $0x70] sm:$0xff]   ;;  %v132_v39 = vrot.slane %v127_v37, %v131_v36  ;;  %v136_v40 = vrot.slane %v127_v37, %v135_v38  ;;  %v519_v63 = vunpack.c.l.s4 %v916_v62 }
  0x8a   :  { %v703_v24 = vld [vmem:[#allocation8 + $0x30] sm:$0xff]   ;;  %v704_v25 = vld [vmem:[#allocation8 + $0x78] sm:$0xff]   ;;  %v706_v27 = vld [vmem:[#allocation11] sm:$0xff]  }
  0x8b   :  { %610 = vmatpush3.bf16.msra.mxu1 %v693_v12  ;;  %v705_v26 = vld [vmem:[#allocation8 + $0x38] sm:$0xff]   ;;  %v707_v29 = vld [vmem:[#allocation11 + $0x8] sm:$0xff]   ;;  %v710_v32 = vld [vmem:[#allocation11 + $0x20] sm:$0xff]   ;;  %v520_v0 = vunpack.c.0.s8 %v519_v63 }
  0x8c   :  { %188 = vmatpush1.bf16.msra.mxu0 %v686_v6  ;;  %611 = vmatprep.subr.bf16.mxu1 %v694_v13  ;;  %v708_v30 = vld [vmem:[#allocation11 + $0x10] sm:$0xff]   ;;  %v709_v31 = vld [vmem:[#allocation11 + $0x18] sm:$0xff]   ;;  %v711_v33 = vld [vmem:[#allocation11 + $0x28] sm:$0xff]  }
  0x8d   :  { %189 = vmatprep.subr.bf16.mxu0 %v687_v7  ;;  %v712_v51 = vld [vmem:[#allocation11 + $0x30] sm:$0xff]   ;;  %v713_v52 = vld [vmem:[#allocation11 + $0x38] sm:$0xff]   ;;  %v596_v1 = vld [vmem:[#allocation13] ss:$0 sm:$0xff]  ;;  %v523_v4 = vsub.s32 %v520_v0, %v130_v35 }
  0x8e   :  { %v579_v54 = vld [vmem:[#allocation10] ss:$0 sm:$0xff] }
  0x8f   :  { %612 = vmatpush3.bf16.msra.mxu1 %v695_v15 }
  0x90   :  { %190 = vmatpush1.bf16.msra.mxu0 %v689_v11  ;;  %613 = vmatprep.subr.bf16.mxu1 %v696_v17 }
  0x91   :  { %638 = vmatprep.subr.bf16.mxu0 %v914_v28 }
  0x93   :  { %578 = vmatmul.mubr.msk.bf16.vlgmr.msra.gmra.mrb[0].mxu0 %vm179_vm0, %v118_v16  ;;  %614 = vmatpush3.bf16.msra.mxu1 %v697_v18 }
  0x94   :  { %615 = vmatprep.subr.bf16.mxu1 %v698_v19  ;;  %639 = vmatpush3.bf16.msra.mxu0 %v706_v27 }
  0x95   :  { %640 = vmatprep.subr.bf16.mxu0 %v914_v28  ;;  %654 = vmatprep.mubr.msk.bf16.mxu0 %vm915_vm1, %v914_v28 }
  0x97   :  { %616 = vmatpush3.bf16.msra.mxu1 %v699_v20 }
  0x98   :  { %617 = vmatprep.subr.bf16.mxu1 %v700_v21  ;;  %641 = vmatpush3.bf16.msra.mxu0 %v707_v29 }
  0x99   :  { %642 = vmatprep.subr.bf16.mxu0 %v914_v28 }
  0x9b   :  { %618 = vmatpush3.bf16.msra.mxu1 %v701_v22 }
  0x9c   :  { %619 = vmatprep.subr.bf16.mxu1 %v702_v23  ;;  %643 = vmatpush3.bf16.msra.mxu0 %v708_v30 }
  0x9d   :  { %644 = vmatprep.subr.bf16.mxu0 %v914_v28 }
  0x9f   :  { %620 = vmatpush3.bf16.msra.mxu1 %v703_v24 }
  0xa0   :  { %621 = vmatprep.subr.bf16.mxu1 %v704_v25  ;;  %645 = vmatpush3.bf16.msra.mxu0 %v709_v31 }
  0xa1   :  { %646 = vmatprep.subr.bf16.mxu0 %v914_v28 }
  0xa3   :  { %622 = vmatpush3.bf16.msra.mxu1 %v705_v26 }
  0xa4   :  { %647 = vmatpush3.bf16.msra.mxu0 %v710_v32 }
  0xa5   :  { %648 = vmatprep.subr.bf16.mxu0 %v914_v28 }
  0xa8   :  { %649 = vmatpush3.bf16.msra.mxu0 %v711_v33 }
  0xa9   :  { %650 = vmatprep.subr.bf16.mxu0 %v914_v28 }
  0xac   :  { %651 = vmatpush3.bf16.msra.mxu0 %v712_v51 }
  0xad   :  { %652 = vmatprep.subr.bf16.mxu0 %v914_v28 }
  0xb0   :  { %653 = vmatpush3.bf16.msra.mxu0 %v713_v52 }
 0x166   :  { %v217_v41 = vpop.f32.mrb[0].mxu0 }
 0x167   :  { %v218_v42 = vadd.f32 %v217_v41, %v132_v39  ;;  %v219_v43 = vpop.f32.mrb[1].mxu0 }
 0x168   :  { %v220_v44 = vadd.f32 %v219_v43, %v136_v40  ;;  %v221_v45 = vpop.f32.mrb[2].mxu0 }
 0x169   :  { %v224_v46 = vmax.f32 %v218_v42, 0.0  ;;  %v222_v47 = vpop.f32.mrb[3].mxu0 }
 0x16a   :  { %v225_v48 = vmax.f32 %v220_v44, 0.0 }
 0x16b   :  { %v226_v50 = vpack.c.bf16 %v224_v46, %v224_v46 }
 0x16c   :  { %v227_v49 = vpack.c.bf16 %v225_v48, %v225_v48 }
 0x16e   :  { %395 = vmatprep.mubr.bf16.mxu1 %v227_v49 }
 0x16f   :  { %396 = vmatmul.mubr.bf16.vlgmr.msra.gmra.mrb[0].mxu1 %v226_v50 }
 0x242   :  { %v623_v53 = vpop.f32.mrb[0].mxu1 }
 0x243   :  { %v624_v55 = vpop.f32.mrb[1].mxu1 }
 0x244   :  { %v625_v56 = vadd.f32 %v624_v55, %v623_v53  ;;  %v626_v57 = vpop.f32.mrb[2].mxu1 }
 0x245   :  { %v627_v58 = vpop.f32.mrb[3].mxu1 }
 0x246   :  { %v398_v59 = vadd.f32 %v625_v56, %v579_v54 }
 0x248   :  { %v403_v60 = vmax.f32 %v398_v59, 0.0 }
 0x24a   :  { %v404_v61 = vpack.c.bf16 %v403_v60, %v403_v60 }
 0x24c   :  { %655 = vmatmul.mubr.bf16.vlgmr.msra.gmra.mrb[4].mxu0 %v404_v61 }
 0x31f   :  { %v510_v2 = vpop.f32.mrb[4].mxu0 }
 0x320   :  { %v511_v3 = vadd.f32 %v596_v1, %v510_v2  ;;  %v656_v5 = vpop.f32.mrb[5].mxu0 }
 0x321   :  { %v513_v6 = vpop.f32.mrb[6].mxu0 }
 0x322   :  { %v516_v7 = vpack.c.bf16 %v511_v3, %v511_v3  ;;  %v657_v8 = vpop.f32.mrb[7].mxu0 }
 0x324   :  { %v524_v9 = vrot.slane %v516_v7, %v523_v4 }
 0x326   :  { %v525_v10 = vcombine.high %v524_v9, %v524_v9  ;;  %v532_v11 = vrot.slane %v524_v9, %v523_v4  ;;  %605 = vst.sshfl [vmem:[#allocation14] sm:$0x1 pattern:$0x73625140] %v524_v9 }
 0x328   :  { %v539_v12 = vrot.slane %v525_v10, %v523_v4  ;;  %v540_v13 = vcombine.high %v532_v11, %v532_v11  ;;  %606 = vst.sshfl [vmem:[#allocation14 + $0x1] sm:$0x1 pattern:$0x73625140] %v525_v10 }
 0x32a   :  { %v541_v14 = vcombine.high %v539_v12, %v539_v12  ;;  %548 = vst [vmem:[#allocation14 + $0x2] sm:$0x1] %v540_v13 }
 0x32c   :  { %549 = vst [vmem:[#allocation14 + $0x3] sm:$0x1] %v541_v14 }
 0x32d   :  { %554 = vsyncadd [#allocation4], 48  ;;  %s917_s6 = smov [#allocation14]  }
 0x32e   :  { %s555_s3 = sshll.u32 %s917_s6, 4  ;;  %s556_s3 = int_to_ptr.vmem [resolvable:$true] %s555_s3 }
 0x32f   :  { %s868_s16 = scalar_lea.vmem %s556_s3, 16  ;;  %s872_s0 = scalar_lea.vmem %s556_s3, 64 }
 0x330   :  { %p869_p0 = scmp.ne.s32.totalorder %s556_s3, %s868_s16  ;;  %p873_p1 = scmp.lt.s32.totalorder %s556_s3, %s556_s3 }
 0x331   :  { %p874_p2 = scmp.lt.s32.totalorder %s872_s0, %s868_s16 }
 0x333   :  { %p875_p3 = por %p874_p2, %p873_p1 }
 0x335   :  { %p876_p4 = pnand %p875_p3, %p869_p0 }
 0x337   :  { %879 = shalt.err (!%p876_p4)
}
 0x338   :  { %s880_s18 = scalar_lea.hbm %s1071_s7, 16 }
 0x339   :  { %p881_p5 = scmp.ne.s32.totalorder %s1071_s7, %s880_s18  ;;  %p884_p6 = scmp.lt.u32.totalorder %s880_s18, %s1071_s7 }
 0x33b   :  { %p886_p7 = pnand %p884_p6, %p881_p5 }
 0x33d   :  { %889 = shalt.err (!%p886_p7)
}
 0x33e   :  { %s918_s23 = smov 16   ;;  %s919_s24 = smov 1  }
 0x33f   :  { %561 = dma.vmem_to_hbm [thread:$0]  %s556_s3, 16, %s1071_s7, [#allocation4], %s918_s23, %s918_s23, %s919_s24  }
 0x340   :  { %898 = dma.done.wait [#allocation4], 64  }
 0x341   :  { %899 = vsyncadd [#allocation4], 4294967232 }
 0x342   :  { %565 = vsyncpa [#allocation3], 1 }
 0x343   :  { %566 = vsyncpa [#allocation6], 1 }
 0x344   :  { %567 = vsyncpa [#allocation9], 1 }
 0x345   :  { %568 = vsyncpa [#allocation12], 1 }
 0x346   :  { %569 = vsyncpa [#allocation4], 1 }

</bundles_post_ra>
